<compile_context>
chip_gen: v7x
topology: tpu7x:2x2x1
jax: 0.10.0
libtpu: 0.0.40
codegen_flags: <defaults>
</compile_context>

<pallas_src>
import jax
import jax.numpy as jnp
from jax.experimental import pallas as pl
from jax.experimental.pallas import tpu as pltpu

IN_FEATS = 28 * 28      # 784 (fed unpadded; block last dim == full array dim)
HID = 128
OUT = 10                # logical output features
OUT_PAD = 128           # lane-dense width for the final matmul / softmax
TB_MAX = 2048           # max batch tile (x tile f32: 2048*784*4B ~ 6.4 MiB, dbl-buf ~12.8 MiB)
NEG_BIG = -1e30         # bias for padded logit columns -> exp underflows to 0


def mlp_kernel(x_ref, w1_ref, b1_ref, w2_ref, b2_ref, w3_ref, b3_ref, o_ref):
    # x_ref: (tb, 784) f32   w1: (784,128) bf16   w2: (128,128) bf16
    # w3: (128,128) bf16     biases: f32          o_ref: (tb, 10) f32
    x = x_ref[...].astype(jnp.bfloat16)           # VPU cast, hidden under the x DMA

    h1 = jnp.dot(x, w1_ref[...], preferred_element_type=jnp.float32) + b1_ref[...]
    h1 = jnp.maximum(h1, 0.0).astype(jnp.bfloat16)

    h2 = jnp.dot(h1, w2_ref[...], preferred_element_type=jnp.float32) + b2_ref[...]
    h2 = jnp.maximum(h2, 0.0).astype(jnp.bfloat16)

    logits = jnp.dot(h2, w3_ref[...], preferred_element_type=jnp.float32) + b3_ref[...]
    # Padded columns carry zero weights and a -1e30 bias: they never win the max
    # and contribute exp(...) == 0, so log_softmax over the real columns is exact.

    m = jnp.max(logits, axis=-1, keepdims=True)
    shifted = logits - m
    lse = jnp.log(jnp.sum(jnp.exp(shifted), axis=-1, keepdims=True))
    res = shifted - lse

    # Write only the 10 real columns (direct (B, 10) output; no wrapper slice pass).
    o_ref[...] = res[:, :OUT].astype(o_ref.dtype)


def _pick_tb(batch):
    """Batch tile: big tiles for big batches, >=2 grid steps for medium ones."""
    if batch >= 2 * TB_MAX:
        return TB_MAX
    half = (batch + 1) // 2                       # aim for a 2-step grid (v7x: 2 TCs)
    return min(TB_MAX, max(16, ((half + 15) // 16) * 16))   # 16-row (bf16 sublane) aligned


def mlp_forward(x_nchw, w1, b1, w2, b2, w3, b3):
    """x_nchw: (B, 1, 28, 28); weights stored as (in, out) = PyTorch weight.T."""
    x = x_nchw.reshape(-1, IN_FEATS)
    if x.dtype != jnp.float32:
        x = x.astype(jnp.float32)
    B = x.shape[0]

    tb = _pick_tb(B)
    grid = (pl.cdiv(B, tb),)                      # boundary blocks are masked by Pallas

    # Weight prep (tiny, one-time): bf16 matmul operands, f32 biases.
    w1b = w1.astype(jnp.bfloat16)                 # (784, 128) -- no K padding
    w2b = w2.astype(jnp.bfloat16)                 # (128, 128)
    w3p = jnp.zeros((HID, OUT_PAD), jnp.float32).at[:, :OUT].set(
        w3.astype(jnp.float32)).astype(jnp.bfloat16)
    b1r = b1.reshape(1, HID).astype(jnp.float32)
    b2r = b2.reshape(1, HID).astype(jnp.float32)
    b3p = jnp.full((1, OUT_PAD), NEG_BIG, jnp.float32).at[:, :OUT].set(
        b3.reshape(1, OUT).astype(jnp.float32))

    flops = 2 * B * (IN_FEATS * HID + HID * HID + HID * OUT_PAD)
    bytes_accessed = (B * IN_FEATS * 4                                   # x read (f32)
                      + (IN_FEATS * HID + HID * HID + HID * OUT_PAD) * 2  # bf16 weights
                      + (HID + HID + OUT_PAD) * 4                         # biases
                      + B * OUT * 4)                                      # output write

    out = pl.pallas_call(
        mlp_kernel,
        out_shape=jax.ShapeDtypeStruct((B, OUT), jnp.float32),
        grid_spec=pltpu.PrefetchScalarGridSpec(
            num_scalar_prefetch=0,
            grid=grid,
            in_specs=[
                pl.BlockSpec((tb, IN_FEATS), lambda i: (i, 0)),   # last dim == full -> OK
                pl.BlockSpec((IN_FEATS, HID), lambda i: (0, 0)),
                pl.BlockSpec((1, HID), lambda i: (0, 0)),
                pl.BlockSpec((HID, HID), lambda i: (0, 0)),
                pl.BlockSpec((1, HID), lambda i: (0, 0)),
                pl.BlockSpec((HID, OUT_PAD), lambda i: (0, 0)),
                pl.BlockSpec((1, OUT_PAD), lambda i: (0, 0)),
            ],
            out_specs=pl.BlockSpec((tb, OUT), lambda i: (i, 0)),  # last dim == full -> OK
        ),
        compiler_params=pltpu.CompilerParams(
            dimension_semantics=("parallel",),        # batch tiles are independent
            vmem_limit_bytes=32 * 1024 * 1024,        # safe for tb<=2048 on v5e/v6e/v7x
        ),
        cost_estimate=pl.CostEstimate(
            flops=flops,
            transcendentals=B * (OUT_PAD + 1),
            bytes_accessed=bytes_accessed,
        ),
    )(x, w1b, b1r, w2b, b2r, w3p, b3p)

    return out


def init_params(key):
    # Deterministic init; weights stored as (in, out) = PyTorch weight.T
    k1, k2, k3, k4, k5, k6 = jax.random.split(key, 6)
    s1 = 1.0 / jnp.sqrt(IN_FEATS)
    s2 = 1.0 / jnp.sqrt(HID)
    w1 = jax.random.uniform(k1, (IN_FEATS, HID), jnp.float32, -s1, s1)
    b1 = jax.random.uniform(k2, (1, HID), jnp.float32, -s1, s1)
    w2 = jax.random.uniform(k3, (HID, HID), jnp.float32, -s2, s2)
    b2 = jax.random.uniform(k4, (1, HID), jnp.float32, -s2, s2)
    w3 = jax.random.uniform(k5, (HID, OUT), jnp.float32, -s2, s2)
    b3 = jax.random.uniform(k6, (1, OUT), jnp.float32, -s2, s2)
    return w1, b1, w2, b2, w3, b3


if __name__ == "__main__":
    key = jax.random.PRNGKey(0)
    kx, kp = jax.random.split(key)

    # MNIST-like input: (batch=64, channels=1, 28, 28), NCHW like PyTorch
    x = jax.random.normal(kx, (64, 1, 28, 28), jnp.float32)
    params = init_params(kp)

    out = mlp_forward(x, *params)
    out = jax.block_until_ready(out)

    # Reference in plain JAX, mirroring the bf16 operand rounding used on the MXU
    # (f32 accumulation), so the comparison isolates kernel logic.
    w1, b1, w2, b2, w3, b3 = params
    bf = lambda a: a.astype(jnp.bfloat16).astype(jnp.float32)
    xf = bf(x.reshape(-1, IN_FEATS))
    h1 = jnp.maximum(xf @ bf(w1) + b1, 0.0)
    h2 = jnp.maximum(bf(h1) @ bf(w2) + b2, 0.0)
    logits = bf(h2) @ bf(w3) + b3
    ref = jax.nn.log_softmax(logits, axis=-1)

    assert out.shape == (64, OUT)
    assert jnp.allclose(out, ref, atol=2e-3, rtol=2e-3), float(jnp.max(jnp.abs(out - ref)))

    print("KERNEL_OK")
</pallas_src>

<mosaic_0001>
module attributes {stable_mosaic.version = 11 : i64} {
  func.func @mlp_kernel(%arg0: i32, %arg1: memref<32x784xf32, #tpu.memory_space<vmem>>, %arg2: memref<784x128xbf16, #tpu.memory_space<vmem>>, %arg3: memref<1x128xf32, #tpu.memory_space<vmem>>, %arg4: memref<128x128xbf16, #tpu.memory_space<vmem>>, %arg5: memref<1x128xf32, #tpu.memory_space<vmem>>, %arg6: memref<128x128xbf16, #tpu.memory_space<vmem>>, %arg7: memref<1x128xf32, #tpu.memory_space<vmem>>, %arg8: memref<32x10xf32, #tpu.memory_space<vmem>>) attributes {dimension_semantics = [#tpu.dimension_semantics<parallel>], iteration_bounds = array<i64: 2>, scalar_prefetch = 0 : i64, scratch_operands = 0 : i64, tpu.core_type = #tpu.core_type<tc>, window_params = [{transform_indices = @transform_0, window_bounds = array<i64: 32, 784>}, {pipeline_mode = #tpu.pipeline_mode<synchronous>, transform_indices = @transform_1, window_bounds = array<i64: 784, 128>}, {pipeline_mode = #tpu.pipeline_mode<synchronous>, transform_indices = @transform_2, window_bounds = array<i64: 1, 128>}, {pipeline_mode = #tpu.pipeline_mode<synchronous>, transform_indices = @transform_3, window_bounds = array<i64: 128, 128>}, {pipeline_mode = #tpu.pipeline_mode<synchronous>, transform_indices = @transform_4, window_bounds = array<i64: 1, 128>}, {pipeline_mode = #tpu.pipeline_mode<synchronous>, transform_indices = @transform_5, window_bounds = array<i64: 128, 128>}, {pipeline_mode = #tpu.pipeline_mode<synchronous>, transform_indices = @transform_6, window_bounds = array<i64: 1, 128>}, {transform_indices = @transform_7, window_bounds = array<i64: 32, 10>}]} {
    %c0 = arith.constant 0 : index
    %c0_0 = arith.constant 0 : index
    %0 = vector.load %arg1[%c0, %c0_0] : memref<32x784xf32, #tpu.memory_space<vmem>>, vector<32x784xf32>
    %1 = arith.truncf %0 : vector<32x784xf32> to vector<32x784xbf16>
    %c0_1 = arith.constant 0 : index
    %c0_2 = arith.constant 0 : index
    %2 = vector.load %arg2[%c0_1, %c0_2] : memref<784x128xbf16, #tpu.memory_space<vmem>>, vector<784x128xbf16>
    %cst = arith.constant dense<0.000000e+00> : vector<32x128xf32>
    %3 = tpu.matmul %1, %2, %cst {dimension_numbers = #tpu.dot_dimension_numbers<[1], [0], [0], [1], [0, 0, 1, 1], [], []>} : vector<32x784xbf16>, vector<784x128xbf16>, vector<32x128xf32> -> vector<32x128xf32>
    %c0_3 = arith.constant 0 : index
    %c0_4 = arith.constant 0 : index
    %4 = vector.load %arg3[%c0_3, %c0_4] : memref<1x128xf32, #tpu.memory_space<vmem>>, vector<1x128xf32>
    %5 = vector.broadcast %4 : vector<1x128xf32> to vector<32x128xf32>
    %6 = arith.addf %3, %5 : vector<32x128xf32>
    %cst_5 = arith.constant 0.000000e+00 : f32
    %7 = vector.broadcast %cst_5 : f32 to vector<32x128xf32>
    %8 = arith.maximumf %6, %7 : vector<32x128xf32>
    %9 = arith.truncf %8 : vector<32x128xf32> to vector<32x128xbf16>
    %c0_6 = arith.constant 0 : index
    %c0_7 = arith.constant 0 : index
    %10 = vector.load %arg4[%c0_6, %c0_7] : memref<128x128xbf16, #tpu.memory_space<vmem>>, vector<128x128xbf16>
    %cst_8 = arith.constant dense<0.000000e+00> : vector<32x128xf32>
    %11 = tpu.matmul %9, %10, %cst_8 {dimension_numbers = #tpu.dot_dimension_numbers<[1], [0], [0], [1], [0, 0, 1, 1], [], []>} : vector<32x128xbf16>, vector<128x128xbf16>, vector<32x128xf32> -> vector<32x128xf32>
    %c0_9 = arith.constant 0 : index
    %c0_10 = arith.constant 0 : index
    %12 = vector.load %arg5[%c0_9, %c0_10] : memref<1x128xf32, #tpu.memory_space<vmem>>, vector<1x128xf32>
    %13 = vector.broadcast %12 : vector<1x128xf32> to vector<32x128xf32>
    %14 = arith.addf %11, %13 : vector<32x128xf32>
    %cst_11 = arith.constant 0.000000e+00 : f32
    %15 = vector.broadcast %cst_11 : f32 to vector<32x128xf32>
    %16 = arith.maximumf %14, %15 : vector<32x128xf32>
    %17 = arith.truncf %16 : vector<32x128xf32> to vector<32x128xbf16>
    %c0_12 = arith.constant 0 : index
    %c0_13 = arith.constant 0 : index
    %18 = vector.load %arg6[%c0_12, %c0_13] : memref<128x128xbf16, #tpu.memory_space<vmem>>, vector<128x128xbf16>
    %cst_14 = arith.constant dense<0.000000e+00> : vector<32x128xf32>
    %19 = tpu.matmul %17, %18, %cst_14 {dimension_numbers = #tpu.dot_dimension_numbers<[1], [0], [0], [1], [0, 0, 1, 1], [], []>} : vector<32x128xbf16>, vector<128x128xbf16>, vector<32x128xf32> -> vector<32x128xf32>
    %c0_15 = arith.constant 0 : index
    %c0_16 = arith.constant 0 : index
    %20 = vector.load %arg7[%c0_15, %c0_16] : memref<1x128xf32, #tpu.memory_space<vmem>>, vector<1x128xf32>
    %21 = vector.broadcast %20 : vector<1x128xf32> to vector<32x128xf32>
    %22 = arith.addf %19, %21 : vector<32x128xf32>
    %cst_17 = arith.constant dense<0xFF800000> : vector<32xf32>
    %23 = vector.multi_reduction <maximumf>, %22, %cst_17 [1] : vector<32x128xf32> to vector<32xf32>
    %24 = vector.shape_cast %23 : vector<32xf32> to vector<32x1xf32>
    %25 = vector.broadcast %24 : vector<32x1xf32> to vector<32x128xf32>
    %26 = arith.subf %22, %25 : vector<32x128xf32>
    %27 = math.exp %26 : vector<32x128xf32>
    %cst_18 = arith.constant dense<0.000000e+00> : vector<32xf32>
    %28 = vector.multi_reduction <add>, %27, %cst_18 [1] : vector<32x128xf32> to vector<32xf32>
    %29 = vector.shape_cast %28 : vector<32xf32> to vector<32x1xf32>
    %30 = math.log %29 : vector<32x1xf32>
    %31 = vector.broadcast %30 : vector<32x1xf32> to vector<32x128xf32>
    %32 = arith.subf %26, %31 : vector<32x128xf32>
    %33 = vector.extract_strided_slice %32 {offsets = [0, 0], sizes = [32, 10], strides = [1, 1]} : vector<32x128xf32> to vector<32x10xf32>
    %c0_19 = arith.constant 0 : index
    %c0_20 = arith.constant 0 : index
    %34 = vector.load %arg8[%c0_19, %c0_20] : memref<32x10xf32, #tpu.memory_space<vmem>>, vector<32x10xf32>
    tpu.vector_store %arg8[%c0_19, %c0_20], %33 {strides = array<i32>} : memref<32x10xf32, #tpu.memory_space<vmem>>, vector<32x10xf32>,
    return
  }
  func.func @transform_0(%arg0: i32) -> (i32, i32) {
    %c0_i32 = arith.constant 0 : i32
    %c0_i32_0 = arith.constant 0 : i32
    return %arg0, %c0_i32 : i32, i32
  }
  func.func @transform_1(%arg0: i32) -> (i32, i32) {
    %c0_i32 = arith.constant 0 : i32
    %c0_i32_0 = arith.constant 0 : i32
    %c0_i32_1 = arith.constant 0 : i32
    return %c0_i32, %c0_i32_0 : i32, i32
  }
  func.func @transform_2(%arg0: i32) -> (i32, i32) {
    %c0_i32 = arith.constant 0 : i32
    %c0_i32_0 = arith.constant 0 : i32
    %c0_i32_1 = arith.constant 0 : i32
    return %c0_i32, %c0_i32_0 : i32, i32
  }
  func.func @transform_3(%arg0: i32) -> (i32, i32) {
    %c0_i32 = arith.constant 0 : i32
    %c0_i32_0 = arith.constant 0 : i32
    %c0_i32_1 = arith.constant 0 : i32
    return %c0_i32, %c0_i32_0 : i32, i32
  }
  func.func @transform_4(%arg0: i32) -> (i32, i32) {
    %c0_i32 = arith.constant 0 : i32
    %c0_i32_0 = arith.constant 0 : i32
    %c0_i32_1 = arith.constant 0 : i32
    return %c0_i32, %c0_i32_0 : i32, i32
  }
  func.func @transform_5(%arg0: i32) -> (i32, i32) {
    %c0_i32 = arith.constant 0 : i32
    %c0_i32_0 = arith.constant 0 : i32
    %c0_i32_1 = arith.constant 0 : i32
    return %c0_i32, %c0_i32_0 : i32, i32
  }
  func.func @transform_6(%arg0: i32) -> (i32, i32) {
    %c0_i32 = arith.constant 0 : i32
    %c0_i32_0 = arith.constant 0 : i32
    %c0_i32_1 = arith.constant 0 : i32
    return %c0_i32, %c0_i32_0 : i32, i32
  }
  func.func @transform_7(%arg0: i32) -> (i32, i32) {
    %c0_i32 = arith.constant 0 : i32
    %c0_i32_0 = arith.constant 0 : i32
    return %arg0, %c0_i32 : i32, i32
  }
}

</mosaic_0001>

<bundles_post_ra>
// kernel: tpu_custom_call.1
= control target key start
LH: loop header
LB: loop body
LE: loop exit
PB: predicated region body
PF: predicated region fallthrough
CT: control target
= control target key end

     0   :  { %12 = vsyncpa [#allocation3], 0  ;;  %s2247_s0 = inlined_call_operand.hbm [shape: f32[64,784], index: 0, kind: input, shape index: {}]   ;;  %s2248_s1 = inlined_call_operand.hbm [shape: bf16[784,128], index: 1, kind: input, shape index: {}]   ;;  %s2249_s2 = inlined_call_operand.vmem [shape: f32[1,128], index: 2, kind: input, shape index: {}]   ;;  %s2250_s3 = inlined_call_operand.hbm [shape: bf16[128,128], index: 3, kind: input, shape index: {}]   ;;  %s2251_s4 = inlined_call_operand.vmem [shape: f32[1,128], index: 4, kind: input, shape index: {}]   ;;  %s2252_s5 = inlined_call_operand.hbm [shape: bf16[128,128], index: 5, kind: input, shape index: {}]   ;;  %s2253_s6 = inlined_call_operand.vmem [shape: f32[1,128], index: 6, kind: input, shape index: {}]   ;;  %s2254_s7 = inlined_call_operand.vmem [shape: f32[64,10], index: 7, kind: output, shape index: {}]  }
   0x1   :  { %14 = vsyncpa [#allocation3 + $0x1], 0 }
   0x2   :  { %15 = vsyncpa [#allocation5], 0 }
   0x3   :  { %16 = vsyncpa [#allocation8], 0  ;;  %s1989_s24 = smov 0   ;;  %s1991_s25 = smov 0  }
   0x4   :  { %s1993_s26 = smov 0   ;;  %s1995_s27 = smov 0  }
   0x5 LB: > { %s1384_s28 = sadd.s32 4294967295, %s1939_s27   ;;  %p42_p0 = scmp.ne.s32.totalorder %s1931_s25, %s1927_s24  ;;  %s1939_s27 = sphi %s1995_s27, %s2271_s27   ;;  %s1935_s26 = sphi %s1993_s26, %s2270_s26   ;;  %s1931_s25 = sphi %s1991_s25, %s2269_s25   ;;  %s1927_s24 = sphi %s1989_s24, %s2268_s24  }
   0x6   : > { %p2011_p1 = scmp.eq.s32.totalorder %s1384_s28, 0  ;;  %p1386_p2 = scmp.ge.s32.totalorder %s1939_s27, 1 }
   0x7   : > { %p205_p3 = scmp.lt.s32.totalorder %s1939_s27, 3  ;;  %s1941_s9 = smov [#allocation4]  }
   0x8   : > { %s2259_s29 = scalar_select %p2011_p1, 1, 0 }
   0x9   : > { %p2019_p4 = por %p2011_p1, %p42_p0  ;;  %p2023_p5 = pnand %p1386_p2, %p205_p3 }
   0xa   : > { %s217_s10 = sshll.u32 %s1941_s9, 4  ;;  %s1942_s12 = smov [#allocation6]   ;;  %s2027_s10 = int_to_ptr.vmem [resolvable:$true] %s217_s10 }
   0xb   : > { %s2260_s30 = scalar_select %p2019_p4, 1, 0 }
   0xc   : > { %s2261_s8 = scalar_select %p2023_p5, 1, 0 }
   0xd   : > { %p1642_p6 = pneg %p2023_p5  ;;  %s233_s13 = sshll.u32 %s1942_s12, 4  ;;  %s2037_s13 = int_to_ptr.vmem [resolvable:$true] %s233_s13 }
   0xe   : > { %s1943_s14 = smov [#allocation7]   ;;  %s1783_s18 = scalar_lea.hbm %s2248_s1, 6272 }
   0xf   : > { %p2033_p7 = pnand %p1642_p6, %p2011_p1  ;;  %s2039_s15 = sshll.u32 %s1943_s14, 4  ;;  %s250_s15 = int_to_ptr.vmem [resolvable:$true] %s2039_s15 }
  0x10   : > { %p1784_p8 = scmp.ne.s32.totalorder %s2248_s1, %s1783_s18  ;;  %p1790_p12 = scmp.lt.u32.totalorder %s1783_s18, %s2248_s1 }
  0x11   : > { %p2049_p9 = pneg %p2033_p7 }
  0x13   : > { %p1786_p10 = pnand %p2049_p9, %p1784_p8 }
  0x15   : > { %p1787_p11 = pneg %p1786_p10 }
  0x17   : > { %p1792_p13 = pnand %p1790_p12, %p1787_p11 }
  0x19   : > { %1795 = shalt.err (!%p1792_p13)
}
  0x1a   : > { %s1796_s24 = scalar_lea.vmem %s2027_s10, 6272  ;;  %p1804_p6 = scmp.lt.s32.totalorder %s2027_s10, %s2027_s10 }
  0x1b   : > { %p1797_p0 = scmp.ne.s32.totalorder %s2027_s10, %s1796_s24  ;;  %p1805_p1 = scmp.lt.s32.totalorder %s1796_s24, %s1796_s24 }
  0x1d   : > { %p1799_p2 = pnand %p1797_p0, %p2049_p9  ;;  %p1806_p8 = por %p1805_p1, %p1804_p6 }
  0x1f   : > { %p1800_p3 = pneg %p1799_p2 }
  0x21   : > { %p1807_p10 = pnand %p1806_p8, %p1800_p3 }
  0x23   : > { %1810 = shalt.err (!%p1807_p10)
}
  0x24   : > { %s1944_s9 = smov 64   ;;  %s1945_s12 = smov 4  }
  0x25   : > { %1645 = dma.hbm_to_vmem [thread:$0]  (!%p2033_p7), %s2248_s1, 6272, %s2027_s10, [#allocation5], %s1944_s9, %s1944_s9, %s1945_s12  }
  0x26   : > { %s1811_s19 = scalar_lea.hbm %s2250_s3, 1024 }
  0x27   : > { %p1812_p1 = scmp.ne.s32.totalorder %s2250_s3, %s1811_s19  ;;  %p1818_p13 = scmp.lt.u32.totalorder %s1811_s19, %s2250_s3 }
  0x29   : > { %p1814_p11 = pnand %p1812_p1, %p2049_p9 }
  0x2b   : > { %p1815_p12 = pneg %p1814_p11 }
  0x2d   : > { %p1820_p0 = pnand %p1818_p13, %p1815_p12 }
  0x2f   : > { %1823 = shalt.err (!%p1820_p0)
}
  0x30   : > { %s1824_s10 = scalar_lea.vmem %s2037_s13, 1024  ;;  %p1832_p8 = scmp.lt.s32.totalorder %s2037_s13, %s2037_s13 }
  0x31   : > { %p1825_p2 = scmp.ne.s32.totalorder %s2037_s13, %s1824_s10  ;;  %p1833_p10 = scmp.lt.s32.totalorder %s1824_s10, %s1824_s10 }
  0x33   : > { %p1827_p3 = pnand %p1825_p2, %p2049_p9  ;;  %p1834_p1 = por %p1833_p10, %p1832_p8 }
  0x35   : > { %p1828_p6 = pneg %p1827_p3 }
  0x37   : > { %p1835_p11 = pnand %p1834_p1, %p1828_p6 }
  0x39   : > { %1838 = shalt.err (!%p1835_p11)
}
  0x3a   : > { %1648 = dma.hbm_to_vmem [thread:$0]  (!%p2033_p7), %s2250_s3, 1024, %s2037_s13, [#allocation5], %s1944_s9, %s1944_s9, %s1945_s12  }
  0x3b   : > { %s1839_s19 = scalar_lea.hbm %s2252_s5, 1024 }
  0x3c   : > { %p1840_p12 = scmp.ne.s32.totalorder %s2252_s5, %s1839_s19  ;;  %p1846_p2 = scmp.lt.u32.totalorder %s1839_s19, %s2252_s5 }
  0x3e   : > { %p1842_p13 = pnand %p1840_p12, %p2049_p9 }
  0x40   : > { %p1843_p0 = pneg %p1842_p13 }
  0x42   : > { %p1848_p3 = pnand %p1846_p2, %p1843_p0 }
  0x44   : > { %1851 = shalt.err (!%p1848_p3)
}
  0x45   : > { %s1852_s10 = scalar_lea.vmem %s250_s15, 1024  ;;  %p1860_p1 = scmp.lt.s32.totalorder %s250_s15, %s250_s15 }
  0x46   : > { %p1853_p6 = scmp.ne.s32.totalorder %s250_s15, %s1852_s10  ;;  %p1861_p11 = scmp.lt.s32.totalorder %s1852_s10, %s1852_s10 }
  0x48   : > { %p1855_p8 = pnand %p1853_p6, %p2049_p9  ;;  %p1862_p4 = por %p1861_p11, %p1860_p1 }
  0x4a   : > { %p1856_p10 = pneg %p1855_p8 }
  0x4c   : > { %p1863_p5 = pnand %p1862_p4, %p1856_p10 }
  0x4e   : > { %1866 = shalt.err (!%p1863_p5)
}
  0x4f   : > { %1651 = dma.hbm_to_vmem [thread:$0]  (!%p2033_p7), %s2252_s5, 1024, %s250_s15, [#allocation8], %s1944_s9, %s1944_s9, %s1945_s12  }
  0x50   : > { %s2122_s21 = sadd.s32 1, %s1939_s27   ;;  %s29_s16 = sadd.s32 1, %s1935_s26 }
  0x51   : > { %s26_s11 = ssub.s32 %s1939_s27, %s2122_s21  ;;  %p36_p5 = scmp.ne.s32.totalorder %s1935_s26, %s1931_s25 }
  0x52   : > { %p27_p4 = scmp.eq.s32.totalorder %s26_s11, 0  ;;  %p37_p9 = scmp.eq.s32.totalorder %s1939_s27, 0 }
  0x53   : > { %p1659_p12 = scmp.lt.s32.totalorder %s1939_s27, 2  ;;  %s266_s18 = sand.u32 1, %s1935_s26  }
  0x54   : > { %s2132_s17 = scalar_select %p27_p4, %s1935_s26, %s29_s16  }
  0x55   : > { %p38_p13 = por %p37_p9, %p36_p5  ;;  %s1625_s19 = smul.u32 224, %s266_s18 }
  0x56   : > { %s1626_s20 = smul.u32 3584, %s1939_s27  ;;  %s2147_s10 = scalar_lea.sflag [#allocation3], %s266_s18 }
  0x57   : > { %p2136_p0 = pnand %p1659_p12, %p38_p13  ;;  %s270_s23 = scalar_lea.vmem [#allocation2], %s1625_s19 }
  0x58   : > { %s2143_s12 = scalar_lea.hbm %s2247_s0, %s1626_s20  ;;  %s278_s24 = sshll.u32 %s270_s23, 4  ;;  %s2145_s24 = int_to_ptr.vmem [resolvable:$true] %s278_s24 }
  0x59   : > { %s1867_s13 = scalar_lea.hbm %s2143_s12, 3584  ;;  %p1869_p2 = pneg %p2136_p0 }
  0x5a   : > { %p1868_p7 = scmp.ne.s32.totalorder %s2143_s12, %s1867_s13  ;;  %s1872_s16 = scalar_lea.hbm %s2247_s0, 7168 }
  0x5b   : > { %p1873_p8 = scmp.lt.u32.totalorder %s2143_s12, %s2247_s0  ;;  %p1874_p10 = scmp.lt.u32.totalorder %s1872_s16, %s1867_s13 }
  0x5c   : > { %p1870_p3 = pnand %p1869_p2, %p1868_p7  ;;  %p1876_p11 = scmp.lt.u32.totalorder %s1867_s13, %s2143_s12 }
  0x5d   : > { %p1875_p1 = por %p1874_p10, %p1873_p8 }
  0x5e   : > { %p1871_p6 = pneg %p1870_p3 }
  0x5f   : > { %p1877_p4 = por %p1876_p11, %p1875_p1 }
  0x61   : > { %p1878_p5 = pnand %p1877_p4, %p1871_p6 }
  0x63   : > { %1881 = shalt.err (!%p1878_p5)
}
  0x64   : > { %s1882_s18 = scalar_lea.vmem %s2145_s24, 3584  ;;  %s1946_s19 = smov [#allocation2]  }
  0x65   : > { %p1883_p9 = scmp.ne.s32.totalorder %s2145_s24, %s1882_s18  ;;  %s1887_s9 = sshll.u32 %s1946_s19, 4  ;;  %s1888_s9 = int_to_ptr.vmem [resolvable:$false] %s1887_s9 }
  0x66   : > { %s1889_s23 = scalar_lea.vmem %s1888_s9, 7168  ;;  %p1890_p7 = scmp.lt.s32.totalorder %s2145_s24, %s1888_s9 }
  0x67   : > { %p1885_p12 = pnand %p1883_p9, %p1869_p2  ;;  %p1891_p3 = scmp.lt.s32.totalorder %s1889_s23, %s1882_s18 }
  0x69   : > { %p1886_p13 = pneg %p1885_p12  ;;  %p1892_p8 = por %p1891_p3, %p1890_p7 }
  0x6b   : > { %p1893_p10 = pnand %p1892_p8, %p1886_p13 }
  0x6d   : > { %1896 = shalt.err (!%p1893_p10)
}
  0x6e   : > { %s1947_s13 = smov 896   ;;  %s1948_s14 = smov 56  }
  0x6f   : > { %1655 = dma.hbm_to_vmem [thread:$0]  (!%p2136_p0), %s2143_s12, 3584, %s2145_s24, %s2147_s10, %s1947_s13, %s1947_s13, %s1948_s14  }
  0x70   : > { %p2265_p2 = scmp.ne.s32.totalorder %s2261_s8, 0 }
  0x71   : > { %s292_s11 = sand.u32 (!%p2265_p2), 1, %s1931_s25   ;;  %p2266_p6 = scmp.ne.s32.totalorder (!%p2265_p2), %s2260_s30, 0 }
  0x72   : > { %290 = sbr.rel (%p2265_p2) target bundleno = 1185 (0x4a1), region = 48  ;;  %s293_s20 = scalar_lea.sflag (!%p2265_p2), [#allocation3], %s292_s11 }
  0x73   : > { %s1627_s16 = smul.u32 (!%p2265_p2), 224, %s292_s11 }
  0x75   : > { %s2178_s15 = scalar_lea.vmem (!%p2265_p2), [#allocation2], %s1627_s16 }
  0x79   : > { %1914 = dma.done.wait (%p2266_p6), %s293_s20, 3584  }
  0x7a   : > { %1916 = vsyncadd (%p2266_p6), %s293_s20, 4294963712  ;;  %p2267_p1 = scmp.ne.s32.totalorder %s2259_s29, 0 }
  0x7c   : > { %1918 = dma.done.wait (%p2267_p1), [#allocation5], 7296  }
  0x7d   : > { %1920 = vsyncadd (%p2267_p1), [#allocation5], 4294960000 }
  0x7e   : > { %1922 = dma.done.wait (%p2267_p1), [#allocation8], 1024  }
  0x7f   : > { %1924 = vsyncadd (%p2267_p1), [#allocation8], 4294966272  ;;  %v1702_v0 = vld [vmem:[#allocation4 + $0x40] sm:$0xff]   ;;  %v1706_v4 = vld [vmem:[#allocation4 + $0x48] sm:$0xff]   ;;  %vm788_vm0 = vcmask 130048   ;;  %s1398_s10 = sshll.u32 %s1384_s28, 2 }
  0x80   : > { %v1703_v1 = vld [vmem:[#allocation4] sm:$0xff]   ;;  %1472 = vmatprep.subr.bf16.mxu0 %v1702_v0  ;;  %v1707_v5 = vld [vmem:[#allocation4 + $0x8] sm:$0xff]   ;;  %v1710_v8 = vld [vmem:[#allocation4 + $0x50] sm:$0xff]   ;;  %p341_p0 = scmp.lt.s32.totalorder %s1398_s10, 7  ;;  %vm1283_vm1 = vcmask 80896  }
  0x81   : > { %v1704_v2 = vld [vmem:[#allocation4 + $0xc0] sm:$0xff]   ;;  %1473 = vmatpush3.bf16.msra.mxu0 %v1703_v1  ;;  %v1708_v6 = vld [vmem:[#allocation4 + $0xc8] sm:$0xff]   ;;  %v1711_v9 = vld [vmem:[#allocation4 + $0x10] sm:$0xff]  }
  0x82   : > { %v1705_v3 = vld [vmem:[#allocation4 + $0x80] sm:$0xff]   ;;  %1500 = vmatprep.subr.bf16.mxu1 %v1704_v2  ;;  %1474 = vmatprep.subr.bf16.mxu0 %v1706_v4  ;;  %v1709_v7 = vld [vmem:[#allocation4 + $0x88] sm:$0xff]   ;;  %v1712_v10 = vld [vmem:[#allocation4 + $0xd0] sm:$0xff]   ;;  %s2273_s10 = smov (!%p341_p0, %s1398_s10), 7 }
  0x83   : > { %1501 = vmatpush3.bf16.msra.mxu1 %v1705_v3  ;;  %v1713_v11 = vld [vmem:[#allocation4 + $0x90] sm:$0xff]   ;;  %v1714_v12 = vld [vmem:[#allocation4 + $0x58] sm:$0xff]   ;;  %v1718_v16 = vld [vmem:[#allocation4 + $0x60] sm:$0xff]   ;;  %s1399_s18 = sshll.u32 %s2273_s10, 3 }
  0x84   : > { %1502 = vmatprep.subr.bf16.mxu1 %v1708_v6  ;;  %v1715_v13 = vld [vmem:[#allocation4 + $0x18] sm:$0xff]   ;;  %v1719_v17 = vld [vmem:[#allocation4 + $0x20] sm:$0xff]   ;;  %v1722_v20 = vld [vmem:[#allocation4 + $0x68] sm:$0xff]   ;;  %s344_s23 = scalar_lea.vmem %s2254_s7, %s1399_s18 }
  0x85   : > { %1475 = vmatpush3.bf16.msra.mxu0 %v1707_v5  ;;  %v1716_v14 = vld [vmem:[#allocation4 + $0xd8] sm:$0xff]   ;;  %v1720_v18 = vld [vmem:[#allocation4 + $0xe0] sm:$0xff]   ;;  %v1723_v21 = vld [vmem:[#allocation4 + $0x28] sm:$0xff]  }
  0x86   : > { %1476 = vmatprep.subr.bf16.mxu0 %v1710_v8  ;;  %v1717_v15 = vld [vmem:[#allocation4 + $0x98] sm:$0xff]   ;;  %v1721_v19 = vld [vmem:[#allocation4 + $0xa0] sm:$0xff]   ;;  %v1724_v22 = vld [vmem:[#allocation4 + $0xe8] sm:$0xff]  }
  0x87   : > { %1503 = vmatpush3.bf16.msra.mxu1 %v1709_v7  ;;  %v1725_v23 = vld [vmem:[#allocation4 + $0xa8] sm:$0xff]   ;;  %v1726_v24 = vld [vmem:[#allocation4 + $0x70] sm:$0xff]   ;;  %v1730_v28 = vld [vmem:[#allocation4 + $0x78] sm:$0xff]  }
  0x88   : > { %1504 = vmatprep.subr.bf16.mxu1 %v1712_v10  ;;  %v1727_v25 = vld [vmem:[#allocation4 + $0x30] sm:$0xff]   ;;  %v1731_v29 = vld [vmem:[#allocation4 + $0x38] sm:$0xff]   ;;  %v348_v31 = vld [vmem:[%s2178_s15 + $0x8] sm:$0xff] }
  0x89   : > { %1477 = vmatpush3.bf16.msra.mxu0 %v1711_v9  ;;  %v1728_v26 = vld [vmem:[#allocation4 + $0xf0] sm:$0xff]   ;;  %v1732_v30 = vld [vmem:[#allocation4 + $0xf8] sm:$0xff]   ;;  %v355_v32 = vld [vmem:[%s2178_s15 + $0x40] sm:$0xff] }
  0x8a   : > { %1478 = vmatprep.subr.bf16.mxu0 %v1714_v12  ;;  %v1729_v27 = vld [vmem:[#allocation4 + $0xb0] sm:$0xff]   ;;  %v376_v33 = vpack.c.bf16 %v355_v32, %v348_v31  ;;  %v1733_v34 = vld [vmem:[#allocation4 + $0xb8] sm:$0xff]   ;;  %v347_v35 = vld [vmem:[%s2178_s15] sm:$0xff] }
  0x8b   : > { %1505 = vmatpush3.bf16.msra.mxu1 %v1713_v11  ;;  %v354_v36 = vld [vmem:[%s2178_s15 + $0x38] sm:$0xff]  ;;  %v1734_v38 = vld [vmem:[#allocation4 + $0x140] sm:$0xff]   ;;  %v357_v40 = vld [vmem:[%s2178_s15 + $0x50] sm:$0xff] }
  0x8c   : > { %1506 = vmatprep.subr.bf16.mxu1 %v1716_v14  ;;  %827 = vmatprep.mubr.bf16.mxu0 %v376_v33  ;;  %v375_v37 = vpack.c.bf16 %v354_v36, %v347_v35  ;;  %v350_v39 = vld [vmem:[%s2178_s15 + $0x18] sm:$0xff]  ;;  %v1735_v42 = vld [vmem:[#allocation4 + $0x100] sm:$0xff]   ;;  %v349_v43 = vld [vmem:[%s2178_s15 + $0x10] sm:$0xff] }
  0x8d   : > { %1479 = vmatpush3.bf16.msra.mxu0 %v1715_v13  ;;  %v378_v41 = vpack.c.bf16 %v357_v40, %v350_v39  ;;  %v356_v44 = vld [vmem:[%s2178_s15 + $0x48] sm:$0xff]  ;;  %v1738_v48 = vld [vmem:[#allocation4 + $0x150] sm:$0xff]   ;;  %v1740_v50 = vld [vmem:[#allocation4 + $0x158] sm:$0xff]  }
  0x8e   : > { %1480 = vmatprep.subr.bf16.mxu0 %v1718_v16  ;;  %v377_v45 = vpack.c.bf16 %v356_v44, %v349_v43  ;;  %v1736_v46 = vld [vmem:[#allocation4 + $0x148] sm:$0xff]   ;;  %v1739_v49 = vld [vmem:[#allocation4 + $0x110] sm:$0xff]   ;;  %v1741_v51 = vld [vmem:[#allocation4 + $0x118] sm:$0xff]  }
  0x8f   : > { %1507 = vmatpush3.bf16.msra.mxu1 %v1717_v15  ;;  %876 = vmatprep.mubr.bf16.mxu1 %v378_v41  ;;  %v1737_v47 = vld [vmem:[#allocation4 + $0x108] sm:$0xff]   ;;  %v362_v52 = vld [vmem:[%s2178_s15 + $0x78] sm:$0xff]  ;;  %v369_v53 = vld [vmem:[%s2178_s15 + $0xb0] sm:$0xff] }
  0x90   : > { %1508 = vmatprep.subr.bf16.mxu1 %v1720_v18  ;;  %v1742_v54 = vld [vmem:[#allocation4 + $0x160] sm:$0xff]   ;;  %v383_v55 = vpack.c.bf16 %v369_v53, %v362_v52  ;;  %v361_v56 = vld [vmem:[%s2178_s15 + $0x70] sm:$0xff]  ;;  %v368_v57 = vld [vmem:[%s2178_s15 + $0xa8] sm:$0xff] }
  0x91   : > { %1481 = vmatpush3.bf16.msra.mxu0 %v1719_v17  ;;  %v1743_v58 = vld [vmem:[#allocation4 + $0x120] sm:$0xff]   ;;  %v382_v59 = vpack.c.bf16 %v368_v57, %v361_v56  ;;  %v364_v60 = vld [vmem:[%s2178_s15 + $0x88] sm:$0xff]  ;;  %v370_v0 = vld [vmem:[%s2178_s15 + $0xb8] sm:$0xff] }
  0x92   : > { %1482 = vmatprep.subr.bf16.mxu0 %v1722_v20  ;;  %v371_v61 = vld [vmem:[%s2178_s15 + $0xc0] sm:$0xff]  ;;  %v1744_v1 = vld [vmem:[#allocation4 + $0x168] sm:$0xff]   ;;  %v1746_v5 = vld [vmem:[#allocation4 + $0x170] sm:$0xff]  }
  0x93   : > { %1509 = vmatpush3.bf16.msra.mxu1 %v1721_v19  ;;  %v363_v62 = vld [vmem:[%s2178_s15 + $0x80] sm:$0xff]  ;;  %v385_v63 = vpack.c.bf16 %v371_v61, %v364_v60  ;;  %v1745_v4 = vld [vmem:[#allocation4 + $0x128] sm:$0xff]   ;;  %v353_v9 = vld [vmem:[%s2178_s15 + $0x30] sm:$0xff] }
  0x94   : > { %1510 = vmatprep.subr.bf16.mxu1 %v1724_v22  ;;  %v384_v2 = vpack.c.bf16 %v370_v0, %v363_v62  ;;  %v1748_v3 = vld [vmem:[#allocation4 + $0x180] sm:$0xff]   ;;  %v352_v6 = vld [vmem:[%s2178_s15 + $0x28] sm:$0xff]  ;;  %v374_v12 = vld [vmem:[%s2178_s15 + $0xd8] sm:$0xff] }
  0x95   : > { %1483 = vmatpush3.bf16.msra.mxu0 %v1723_v21  ;;  %v359_v7 = vld [vmem:[%s2178_s15 + $0x60] sm:$0xff]  ;;  %v360_v10 = vld [vmem:[%s2178_s15 + $0x68] sm:$0xff]  ;;  %v1747_v13 = vld [vmem:[#allocation4 + $0x130] sm:$0xff]  }
  0x96   : > { %1484 = vmatprep.subr.bf16.mxu0 %v1726_v24  ;;  %v380_v8 = vpack.c.bf16 %v359_v7, %v352_v6  ;;  %v367_v11 = vld [vmem:[%s2178_s15 + $0xa0] sm:$0xff]  ;;  %v381_v14 = vpack.c.bf16 %v360_v10, %v353_v9  ;;  %v1749_v16 = vld [vmem:[#allocation4 + $0x178] sm:$0xff]   ;;  %v373_v21 = vld [vmem:[%s2178_s15 + $0xd0] sm:$0xff] }
  0x97   : > { %1511 = vmatpush3.bf16.msra.mxu1 %v1725_v23  ;;  %v388_v15 = vpack.c.bf16 %v374_v12, %v367_v11  ;;  %v1750_v17 = vld [vmem:[#allocation4 + $0x138] sm:$0xff]   ;;  %v351_v18 = vld [vmem:[%s2178_s15 + $0x20] sm:$0xff]  ;;  %v365_v24 = vld [vmem:[%s2178_s15 + $0x90] sm:$0xff] }
  0x98   : > { %1512 = vmatprep.subr.bf16.mxu1 %v1728_v26  ;;  %v358_v19 = vld [vmem:[%s2178_s15 + $0x58] sm:$0xff]  ;;  %v1755_v31 = vld [vmem:[#allocation6 + $0x20] sm:$0xff]   ;;  %v1756_v32 = vld [vmem:[#allocation6 + $0x28] sm:$0xff]  }
  0x99   : > { %1485 = vmatpush3.bf16.msra.mxu0 %v1727_v25  ;;  %v366_v20 = vld [vmem:[%s2178_s15 + $0x98] sm:$0xff]  ;;  %v379_v22 = vpack.c.bf16 %v358_v19, %v351_v18  ;;  %v372_v25 = vld [vmem:[%s2178_s15 + $0xc8] sm:$0xff]  ;;  %v1760_v36 = vld [vmem:[#allocation7 + $0x8] sm:$0xff]  }
  0x9a   : > { %1486 = vmatprep.subr.bf16.mxu0 %v1730_v28  ;;  %v387_v23 = vpack.c.bf16 %v373_v21, %v366_v20  ;;  %v386_v26 = vpack.c.bf16 %v372_v25, %v365_v24  ;;  %v1752_v28 = vld [vmem:[#allocation6 + $0x8] sm:$0xff]   ;;  %v1757_v33 = vld [vmem:[#allocation6 + $0x30] sm:$0xff]   ;;  %v1759_v35 = vld [vmem:[#allocation7] sm:$0xff]  }
  0x9b   : > { %1513 = vmatpush3.bf16.msra.mxu1 %v1729_v27  ;;  %v1751_v27 = vld [vmem:[#allocation6] sm:$0xff]   ;;  %v1764_v40 = vld [vmem:[#allocation7 + $0x28] sm:$0xff]  }
  0x9c   : > { %1514 = vmatprep.subr.bf16.mxu1 %v1732_v30  ;;  %v1754_v30 = vld [vmem:[#allocation6 + $0x18] sm:$0xff]   ;;  %v1763_v39 = vld [vmem:[#allocation7 + $0x20] sm:$0xff]  }
  0x9d   : > { %1487 = vmatpush3.bf16.msra.mxu0 %v1731_v29  ;;  %v1753_v29 = vld [vmem:[#allocation6 + $0x10] sm:$0xff]  }
  0x9e   : > { %1528 = vmatprep.subr.bf16.mxu0 %v1734_v38  ;;  %v1762_v38 = vld [vmem:[#allocation7 + $0x18] sm:$0xff]  }
  0x9f   : > { %1515 = vmatpush3.bf16.msra.mxu1 %v1733_v34  ;;  %v1758_v34 = vld [vmem:[#allocation6 + $0x38] sm:$0xff]  }
  0xa0   : > { %828 = vmatmul.mubr.bf16.vlgmr.msra.gmra.mrb[0].mxu0 %v375_v37  ;;  %1579 = vmatprep.subr.bf16.mxu1 %v1748_v3  ;;  %v1761_v37 = vld [vmem:[#allocation7 + $0x10] sm:$0xff]  }
  0xa1   : > { %1529 = vmatpush3.bf16.msra.mxu0 %v1735_v42  ;;  %835 = vmatprep.mubr.bf16.mxu0 %v383_v55  ;;  %v1400_v42 = vld [vmem:[%s2249_s2] ss:$0 sm:$0xff] }
  0xa2   : > { %877 = vmatmul.mubr.bf16.vlgmr.msra.gmra.mrb[0].mxu1 %v377_v45  ;;  %1530 = vmatprep.subr.bf16.mxu0 %v1736_v46 }
  0xa3   : > { %884 = vmatprep.mubr.bf16.mxu1 %v385_v63  ;;  %1580 = vmatpush3.bf16.msra.mxu1 %v1748_v3 }
  0xa4   : > { %1585 = vmatprep.subr.bf16.mxu1 %v1751_v27 }
  0xa5   : > { %1531 = vmatpush3.bf16.msra.mxu0 %v1737_v47 }
  0xa6   : > { %1532 = vmatprep.subr.bf16.mxu0 %v1738_v48 }
  0xa8   : > { %836 = vmatmul.mubr.bf16.gmra.mrb[4].mxu0 %v382_v59 }
  0xa9   : > { %1533 = vmatpush3.bf16.msra.mxu0 %v1739_v49  ;;  %925 = vmatprep.mubr.bf16.mxu0 %v380_v8 }
  0xaa   : > { %1534 = vmatprep.subr.bf16.mxu0 %v1740_v50  ;;  %885 = vmatmul.mubr.bf16.gmra.mrb[4].mxu1 %v384_v2 }
  0xab   : > { %1581 = vmatprep.mubr.msk.bf16.mxu1 %vm788_vm0, %v381_v14 }
  0xad   : > { %1535 = vmatpush3.bf16.msra.mxu0 %v1741_v51 }
  0xae   : > { %1536 = vmatprep.subr.bf16.mxu0 %v1742_v54 }
  0xb1   : > { %1537 = vmatpush3.bf16.msra.mxu0 %v1743_v58 }
  0xb2   : > { %1538 = vmatprep.subr.bf16.mxu0 %v1744_v1  ;;  %1582 = vmatmul.mubr.msk.bf16.vlgmr.msra.gmra.mrb[8].mxu1 %vm788_vm0, %v388_v15 }
  0xb3   : > { %1586 = vmatpush3.bf16.msra.mxu1 %v1751_v27 }
  0xb4   : > { %1587 = vmatprep.subr.bf16.mxu1 %v1752_v28 }
  0xb5   : > { %1539 = vmatpush3.bf16.msra.mxu0 %v1745_v4 }
  0xb6   : > { %1540 = vmatprep.subr.bf16.mxu0 %v1746_v5 }
  0xb7   : > { %1588 = vmatpush3.bf16.msra.mxu1 %v1752_v28 }
  0xb8   : > { %1589 = vmatprep.subr.bf16.mxu1 %v1753_v29 }
  0xb9   : > { %1541 = vmatpush3.bf16.msra.mxu0 %v1747_v13 }
  0xba   : > { %1542 = vmatprep.subr.bf16.mxu0 %v1749_v16 }
  0xbb   : > { %1590 = vmatpush3.bf16.msra.mxu1 %v1753_v29 }
  0xbc   : > { %1591 = vmatprep.subr.bf16.mxu1 %v1754_v30 }
  0xbd   : > { %1543 = vmatpush3.bf16.msra.mxu0 %v1750_v17 }
  0xbe   : > { %1605 = vmatprep.subr.bf16.mxu0 %v1759_v35 }
  0xbf   : > { %1592 = vmatpush3.bf16.msra.mxu1 %v1754_v30 }
  0xc0   : > { %926 = vmatmul.mubr.bf16.vlgmr.msra.gmra.mrb[8].mxu0 %v379_v22  ;;  %1593 = vmatprep.subr.bf16.mxu1 %v1755_v31 }
  0xc1   : > { %933 = vmatprep.mubr.bf16.mxu0 %v387_v23  ;;  %1606 = vmatpush3.bf16.msra.mxu0 %v1759_v35 }
  0xc2   : > { %1607 = vmatprep.subr.bf16.mxu0 %v1760_v36 }
  0xc3   : > { %1594 = vmatpush3.bf16.msra.mxu1 %v1755_v31 }
  0xc4   : > { %1595 = vmatprep.subr.bf16.mxu1 %v1756_v32 }
  0xc5   : > { %1608 = vmatpush3.bf16.msra.mxu0 %v1760_v36 }
  0xc6   : > { %1609 = vmatprep.subr.bf16.mxu0 %v1761_v37 }
  0xc7   : > { %1596 = vmatpush3.bf16.msra.mxu1 %v1756_v32 }
  0xc8   : > { %934 = vmatmul.mubr.bf16.gmra.mrb[12].mxu0 %v386_v26  ;;  %1597 = vmatprep.subr.bf16.mxu1 %v1757_v33 }
  0xc9   : > { %1610 = vmatpush3.bf16.msra.mxu0 %v1761_v37 }
  0xca   : > { %1611 = vmatprep.subr.bf16.mxu0 %v1762_v38 }
  0xcb   : > { %1598 = vmatpush3.bf16.msra.mxu1 %v1757_v33 }
  0xcc   : > { %1599 = vmatprep.subr.bf16.mxu1 %v1758_v34 }
  0xcd   : > { %1612 = vmatpush3.bf16.msra.mxu0 %v1762_v38 }
  0xce   : > { %1613 = vmatprep.subr.bf16.mxu0 %v1763_v39 }
  0xcf   : > { %1600 = vmatpush3.bf16.msra.mxu1 %v1758_v34 }
  0xd1   : > { %1614 = vmatpush3.bf16.msra.mxu0 %v1763_v39 }
  0xd2   : > { %1615 = vmatprep.subr.bf16.mxu0 %v1764_v40 }
  0xd5   : > { %1616 = vmatpush3.bf16.msra.mxu0 %v1764_v40  ;;  %v1765_v40 = vld [vmem:[#allocation7 + $0x30] sm:$0xff]  }
  0xd6   : > { %1617 = vmatprep.subr.bf16.mxu0 %v1765_v40 }
  0xd9   : > { %1618 = vmatpush3.bf16.msra.mxu0 %v1765_v40 }
 0x173   : > { %v1488_v41 = vpop.f32.mrb[0].mxu0 }
 0x174   : > { %v1489_v43 = vpop.f32.mrb[1].mxu0 }
 0x175   : > { %v1490_v44 = vadd.f32 %v1489_v43, %v1488_v41  ;;  %v1491_v45 = vpop.f32.mrb[2].mxu0  ;;  %v1516_v46 = vpop.f32.mrb[0].mxu1  ;;  %v1766_v41 = vld [vmem:[#allocation7 + $0x38] sm:$0xff]  }
 0x176   : > { %v1492_v47 = vpop.f32.mrb[3].mxu0  ;;  %v1517_v50 = vpop.f32.mrb[1].mxu1  ;;  %1619 = vmatprep.subr.bf16.mxu0 %v1766_v41 }
 0x177   : > { %v830_v48 = vadd.f32 %v1490_v44, %v1400_v42  ;;  %v1493_v49 = vadd.f32 %v1492_v47, %v1491_v45  ;;  %v1518_v51 = vadd.f32 %v1517_v50, %v1516_v46  ;;  %v1519_v52 = vpop.f32.mrb[2].mxu1  ;;  %1620 = vmatpush3.bf16.msra.mxu0 %v1766_v41 }
 0x178   : > { %v1520_v54 = vpop.f32.mrb[3].mxu1 }
 0x179   : > { %v833_v53 = vadd.f32 %v1493_v49, %v1400_v42  ;;  %v879_v55 = vadd.f32 %v1518_v51, %v830_v48  ;;  %v1521_v56 = vadd.f32 %v1520_v54, %v1519_v52 }
 0x17b   : > { %v882_v57 = vadd.f32 %v1521_v56, %v833_v53  ;;  %v1494_v58 = vpop.f32.mrb[4].mxu0 }
 0x17c   : > { %v1495_v59 = vpop.f32.mrb[5].mxu0 }
 0x17d   : > { %v1496_v60 = vadd.f32 %v1495_v59, %v1494_v58  ;;  %v1497_v61 = vpop.f32.mrb[6].mxu0  ;;  %v1522_v62 = vpop.f32.mrb[4].mxu1 }
 0x17e   : > { %v1498_v63 = vpop.f32.mrb[7].mxu0  ;;  %v1523_v0 = vpop.f32.mrb[5].mxu1 }
 0x17f   : > { %v838_v1 = vadd.f32 %v1496_v60, %v1400_v42  ;;  %v1499_v2 = vadd.f32 %v1498_v63, %v1497_v61  ;;  %v1524_v3 = vadd.f32 %v1523_v0, %v1522_v62  ;;  %v1525_v4 = vpop.f32.mrb[6].mxu1 }
 0x180   : > { %v1526_v5 = vpop.f32.mrb[7].mxu1 }
 0x181   : > { %v841_v6 = vadd.f32 %v1499_v2, %v1400_v42  ;;  %v887_v7 = vadd.f32 %v1524_v3, %v838_v1  ;;  %v1527_v8 = vadd.f32 %v1526_v5, %v1525_v4  ;;  %v1452_v42 = vld [vmem:[%s2251_s4] ss:$0 sm:$0xff] }
 0x183   : > { %v890_v9 = vadd.f32 %v1527_v8, %v841_v6 }
 0x185   : > { %v1583_v10 = vpop.f32.mrb[8].mxu1 }
 0x186   : > { %v976_v11 = vpop.f32.mrb[9].mxu1 }
 0x187   : > { %v1584_v12 = vpop.f32.mrb[10].mxu1 }
 0x188   : > { %v979_v13 = vpop.f32.mrb[11].mxu1 }
 0x193   : > { %v1544_v14 = vpop.f32.mrb[8].mxu0 }
 0x194   : > { %v1545_v15 = vpop.f32.mrb[9].mxu0 }
 0x195   : > { %v1546_v16 = vadd.f32 %v1545_v15, %v1544_v14  ;;  %v1547_v17 = vpop.f32.mrb[10].mxu0 }
 0x196   : > { %v1548_v18 = vpop.f32.mrb[11].mxu0 }
 0x197   : > { %v1549_v19 = vadd.f32 %v1548_v18, %v1547_v17  ;;  %v928_v20 = vadd.f32 %v1546_v16, %v879_v55 }
 0x199   : > { %v977_v21 = vadd.f32 %v976_v11, %v928_v20  ;;  %v931_v22 = vadd.f32 %v1549_v19, %v882_v57  ;;  %v1461_v57 = vld [vmem:[%s2253_s6] ss:$0 sm:$0xff] }
 0x19b   : > { %v980_v23 = vadd.f32 %v979_v13, %v931_v22  ;;  %v1550_v24 = vpop.f32.mrb[12].mxu0  ;;  %v991_v26 = vmax.f32 %v977_v21, 0.0 }
 0x19c   : > { %v1551_v25 = vpop.f32.mrb[13].mxu0 }
 0x19d   : > { %v992_v27 = vmax.f32 %v980_v23, 0.0  ;;  %v1552_v28 = vadd.f32 %v1551_v25, %v1550_v24  ;;  %v1553_v29 = vpop.f32.mrb[14].mxu0 }
 0x19e   : > { %v1554_v30 = vpop.f32.mrb[15].mxu0 }
 0x19f   : > { %v995_v31 = vpack.c.bf16 %v992_v27, %v991_v26  ;;  %v936_v32 = vadd.f32 %v1552_v28, %v887_v7  ;;  %v1555_v33 = vadd.f32 %v1554_v30, %v1553_v29 }
 0x1a1   : > { %v985_v34 = vadd.f32 %v1583_v10, %v936_v32  ;;  %v939_v35 = vadd.f32 %v1555_v33, %v890_v9  ;;  %1601 = vmatprep.mubr.bf16.mxu1 %v995_v31 }
 0x1a3   : > { %v988_v36 = vadd.f32 %v1584_v12, %v939_v35  ;;  %v993_v37 = vmax.f32 %v985_v34, 0.0 }
 0x1a5   : > { %v994_v38 = vmax.f32 %v988_v36, 0.0 }
 0x1a7   : > { %v996_v39 = vpack.c.bf16 %v994_v38, %v993_v37 }
 0x1a9   : > { %1602 = vmatmul.mubr.bf16.vlgmr.msra.gmra.mrb[12].mxu1 %v996_v39 }
 0x27c   : > { %v1603_v43 = vpop.f32.mrb[12].mxu1 }
 0x27d   : > { %v1111_v44 = vadd.f32 %v1603_v43, %v1452_v42  ;;  %v1102_v45 = vpop.f32.mrb[13].mxu1 }
 0x27e   : > { %v1103_v46 = vadd.f32 %v1452_v42, %v1102_v45  ;;  %v1604_v47 = vpop.f32.mrb[14].mxu1 }
 0x27f   : > { %v1114_v48 = vadd.f32 %v1604_v47, %v1452_v42  ;;  %v1105_v49 = vpop.f32.mrb[15].mxu1  ;;  %v1119_v51 = vmax.f32 %v1111_v44, 0.0 }
 0x280   : > { %v1106_v50 = vadd.f32 %v1452_v42, %v1105_v49  ;;  %v1117_v53 = vmax.f32 %v1103_v46, 0.0 }
 0x281   : > { %v1120_v52 = vmax.f32 %v1114_v48, 0.0 }
 0x282   : > { %v1118_v54 = vmax.f32 %v1106_v50, 0.0 }
 0x283   : > { %v1122_v55 = vpack.c.bf16 %v1120_v52, %v1119_v51 }
 0x284   : > { %v1121_v56 = vpack.c.bf16 %v1118_v54, %v1117_v53 }
 0x286   : > { %1621 = vmatprep.mubr.bf16.mxu0 %v1121_v56 }
 0x287   : > { %1622 = vmatmul.mubr.bf16.vlgmr.msra.gmra.mrb[16].mxu0 %v1122_v55 }
 0x35a   : > { %v1623_v58 = vpop.f32.mrb[16].mxu0 }
 0x35b   : > { %v1237_v59 = vadd.f32 %v1623_v58, %v1461_v57  ;;  %v1228_v60 = vpop.f32.mrb[17].mxu0 }
 0x35c   : > { %v1229_v61 = vadd.f32 %v1461_v57, %v1228_v60  ;;  %v1624_v62 = vpop.f32.mrb[18].mxu0 }
 0x35d   : > { %1247 = vmax.xlane.f32.xlu1 %v1237_v59  ;;  %v1231_v63 = vpop.f32.mrb[19].mxu0  ;;  %v1240_v0 = vadd.f32 %v1624_v62, %v1461_v57 }
 0x35e   : > { %1243 = vmax.xlane.f32.xlu0 %v1229_v61  ;;  %v1232_v1 = vadd.f32 %v1461_v57, %v1231_v63 }
 0x361   : > { %1249 = vmax.xlane.f32.xlu1 %v1240_v0 }
 0x362   : > { %1245 = vmax.xlane.f32.xlu0 %v1232_v1 }
 0x3ea   : > { %v1248_v2 = vpop.xlane.xlu1 %1247 }
 0x3eb   : > { %v1253_v3 = vsub.f32 %v1237_v59, %v1248_v2  ;;  %v1244_v4 = vpop.xlane.xlu0 %1243 }
 0x3ec   : > { %v1251_v5 = vsub.f32 %v1229_v61, %v1244_v4 }
 0x3ed   : > { %v1259_v8 = vmul.f32 1.442695, %v1253_v3 }
 0x3ee   : > { %v1255_v6 = vmul.f32 1.442695, %v1251_v5  ;;  %v1250_v7 = vpop.xlane.xlu1 %1249 }
 0x3ef   : > { %v1246_v9 = vpop.xlane.xlu0 %1245  ;;  %v1254_v10 = vsub.f32 %v1240_v0, %v1250_v7 }
 0x3f0   : > { %1767 = vpow2.f32 %v1255_v6  ;;  %v1252_v11 = vsub.f32 %v1232_v1, %v1246_v9 }
 0x3f1   : > { %1769 = vpow2.f32 %v1259_v8  ;;  %v1261_v13 = vmul.f32 1.442695, %v1254_v10 }
 0x3f2   : > { %v1257_v12 = vmul.f32 1.442695, %v1252_v11 }
 0x3f4   : > { %1771 = vpow2.f32 %v1257_v12 }
 0x3f5   : > { %1773 = vpow2.f32 %v1261_v13 }
 0x3fa   : > { %v1768_v14 = vpop.eup %1767 }
 0x3fb   : > { %1263 = vadd.xlane.f32.xlu0 %v1768_v14  ;;  %v1770_v15 = vpop.eup %1769 }
 0x3fe   : > { %v1772_v16 = vpop.eup %1771 }
 0x3ff   : > { %1267 = vadd.xlane.f32.xlu0 %v1770_v15  ;;  %1265 = vadd.xlane.f32.xlu1 %v1772_v16  ;;  %v1774_v17 = vpop.eup %1773 }
 0x403   : > { %1269 = vadd.xlane.f32.xlu1 %v1774_v17 }
 0x488   : > { %v1264_v18 = vpop.xlane.xlu0 %1263 }
 0x489   : > { %1775 = vlog2.f32 %v1264_v18 }
 0x48c   : > { %v1266_v19 = vpop.xlane.xlu1 %1265  ;;  %v1268_v20 = vpop.xlane.xlu0 %1267 }
 0x48d   : > { %1777 = vlog2.f32 %v1266_v19 }
 0x48e   : > { %1779 = vlog2.f32 %v1268_v20 }
 0x490   : > { %v1270_v21 = vpop.xlane.xlu1 %1269 }
 0x491   : > { %1781 = vlog2.f32 %v1270_v21 }
 0x493   : > { %v1776_v22 = vpop.eup %1775 }
 0x494   : > { %v1272_v23 = vmul.f32 0.6931472, %v1776_v22 }
 0x496   : > { %v1279_v24 = vsub.f32 %v1251_v5, %v1272_v23 }
 0x497   : > { %v1778_v25 = vpop.eup %1777 }
 0x498   : > { %v1780_v26 = vpop.eup %1779  ;;  %1284 = vst.msk [vmem:[%s344_s23] sm:$0xff] %vm1283_vm1, %v1279_v24  ;;  %v1274_v27 = vmul.f32 0.6931472, %v1778_v25 }
 0x499   : > { %v1276_v28 = vmul.f32 0.6931472, %v1780_v26 }
 0x49a   : > { %v1280_v29 = vsub.f32 %v1252_v11, %v1274_v27 }
 0x49b   : > { %v1782_v30 = vpop.eup %1781  ;;  %v1281_v31 = vsub.f32 %v1253_v3, %v1276_v28 }
 0x49c   : > { %1285 = vst.msk [vmem:[%s344_s23 + $0x8] sm:$0xff] %vm1283_vm1, %v1280_v29  ;;  %v1278_v32 = vmul.f32 0.6931472, %v1782_v30 }
 0x49d   : > { %1286 = vst.msk [vmem:[%s344_s23 + $0x10] sm:$0xff] %vm1283_vm1, %v1281_v31 }
 0x49e   : > { %v1282_v33 = vsub.f32 %v1254_v10, %v1278_v32 }
 0x4a0   : > { %1287 = vst.msk [vmem:[%s344_s23 + $0x18] sm:$0xff] %vm1283_vm1, %v1282_v33 }
 0x4a1 PF: > { %p19_p11 = scmp.ge.s32.totalorder %s2122_s21, 4   ;;  %s2268_s24 = smov %s1931_s25 }
 0x4a2   : > { %s2269_s25 = smov %s1935_s26  ;;  %s2270_s26 = smov %s2132_s17 }
 0x4a3   : > { %s2271_s27 = smov %s2122_s21  ;;  %21 = sbr.rel (!%p19_p11) target bundleno = 5 (0x5), region = 100 }
 0x4aa   :  { %1310 = vsyncpa [#allocation3], 1 }
 0x4ab   :  { %1312 = vsyncpa [#allocation3 + $0x1], 1 }
 0x4ac   :  { %1313 = vsyncpa [#allocation5], 1 }
 0x4ad   :  { %1314 = vsyncpa [#allocation8], 1 }

</bundles_post_ra>
